<compile_context>
chip_gen: v7x
topology: tpu7x:2x2x1
jax: 0.10.0
libtpu: 0.0.40
codegen_flags: <defaults>
</compile_context>

<pallas_src>
import functools

import jax
import jax.numpy as jnp
import numpy as np
from jax.experimental import pallas as pl
from jax.experimental.pallas import tpu as pltpu


def _downsample_kernel(x_ee_ref, x_eo_ref, x_oe_ref, x_oo_ref,
                       scale_ref, wt_ref, bias_ref, o_ref, *, Ho, Wo, C):
    # Parity-split taps of the zero-padded NHWC input (C on lanes):
    ee = x_ee_ref[...]                      # (Bt, Ho+1, Wo+1, C)  taps (even h, even w)
    eo = x_eo_ref[...]                      # (Bt, Ho+1, Wo,   C)  taps (even h, odd  w)
    oe = x_oe_ref[...]                      # (Bt, Ho,   Wo+1, C)  taps (odd  h, even w)
    oo = x_oo_ref[...]                      # (Bt, Ho,   Wo,   C)  taps (odd  h, odd  w)
    Bt = oo.shape[0]

    # 3x3 window sum with stride 2: 9 taps = 8 contiguous-slice adds (pure VPU,
    # no strided slices, no cross-lane work).
    s = (ee[:, :Ho, :Wo, :] + ee[:, :Ho, 1:, :] +
         ee[:, 1:, :Wo, :] + ee[:, 1:, 1:, :] +
         eo[:, :Ho, :, :] + eo[:, 1:, :, :] +
         oe[:, :, :Wo, :] + oe[:, :, 1:, :] +
         oo)                                # (Bt, Ho, Wo, C)

    # ceil_mode divisor: precomputed reciprocal counts, one broadcast multiply
    # (replaces the old per-step iota/mod/divide block).
    pooled = s * scale_ref[...]             # scale: (1, Ho, Wo, 1)

    # 1x1 conv as a lane-dense MXU matmul: (Bt*Ho*Wo, C) @ (C, C) + bias.
    p2 = pooled.reshape(Bt * Ho * Wo, C)
    out = jnp.dot(p2, wt_ref[...], preferred_element_type=jnp.float32)
    out = out + bias_ref[...]               # bias: (1, C) broadcast
    o_ref[...] = out.reshape(Bt, Ho, Wo, C).astype(o_ref.dtype)


@functools.partial(jax.jit, static_argnames=("batch_block",))
def downsample(x, w_conv, b_conv, *, batch_block=None):
    """x: (B, C, H, W) NCHW; w_conv: (C, C) (1x1 conv weight squeezed); b_conv: (C,)."""
    B, C, H, W = x.shape
    # ceil_mode output size for kernel=3, stride=2, padding=0
    Ho = -(-(H - 3) // 2) + 1
    Wo = -(-(W - 3) // 2) + 1
    Hp, Wp = 2 * Ho + 1, 2 * Wo + 1         # pad so every window has 9 (maybe zero) taps

    # ---- wrapper-side layout plumbing (fused by XLA) ----
    xt = jnp.transpose(x, (0, 2, 3, 1)).astype(jnp.float32)          # NCHW -> NHWC
    xt = jnp.pad(xt, ((0, 0), (0, Hp - H), (0, Wp - W), (0, 0)))      # zero pad H, W
    x_ee = xt[:, 0::2, 0::2, :]             # (B, Ho+1, Wo+1, C)
    x_eo = xt[:, 0::2, 1::2, :]             # (B, Ho+1, Wo,   C)
    x_oe = xt[:, 1::2, 0::2, :]             # (B, Ho,   Wo+1, C)
    x_oo = xt[:, 1::2, 1::2, :]             # (B, Ho,   Wo,   C)

    # ceil_mode divisor = clipped in-bounds tap count (padding=0 in the module),
    # folded into a static reciprocal scale (batch independent, computed once).
    cnt_h = np.minimum(2 * np.arange(Ho) + 3, H) - 2 * np.arange(Ho)
    cnt_w = np.minimum(2 * np.arange(Wo) + 3, W) - 2 * np.arange(Wo)
    scale = jnp.asarray(
        (1.0 / (cnt_h[:, None] * cnt_w[None, :])).astype(np.float32)
    ).reshape(1, Ho, Wo, 1)

    w_t = jnp.asarray(w_conv, jnp.float32).T.reshape(C, C)            # pooled @ w_conv^T
    bias = jnp.asarray(b_conv, jnp.float32).reshape(1, C)

    # ---- batch blocking: amortize per-grid-step overhead within a VMEM budget ----
    if batch_block is None:
        bytes_per_image = 4 * C * (Hp * Wp + Ho * Wo)   # parity splits + output block
        budget = 12 * 1024 * 1024                       # per pipeline slot (x2 double-buffered)
        batch_block = max(1, min(B, budget // max(bytes_per_image, 1)))
        while B % batch_block:
            batch_block -= 1
    Bt = batch_block
    grid = (B // Bt,)

    kernel = functools.partial(_downsample_kernel, Ho=Ho, Wo=Wo, C=C)
    # NOTE: constant inputs (scale/w_t/bias) are tiny; pipeline_mode=pl.Buffered(1)
    # could halve their buffering on v7x but is unnecessary at these sizes.
    # TODO(synk): optionally cast x / pooling taps to bf16 for the MXU path on v6e/v7x.
    out_nhwc = pl.pallas_call(
        kernel,
        out_shape=jax.ShapeDtypeStruct((B, Ho, Wo, C), jnp.float32),
        grid_spec=pltpu.PrefetchScalarGridSpec(
            num_scalar_prefetch=0,
            grid=grid,
            in_specs=[
                pl.BlockSpec((Bt, Ho + 1, Wo + 1, C), lambda b: (b, 0, 0, 0)),
                pl.BlockSpec((Bt, Ho + 1, Wo, C), lambda b: (b, 0, 0, 0)),
                pl.BlockSpec((Bt, Ho, Wo + 1, C), lambda b: (b, 0, 0, 0)),
                pl.BlockSpec((Bt, Ho, Wo, C), lambda b: (b, 0, 0, 0)),
                pl.BlockSpec((1, Ho, Wo, 1), lambda b: (0, 0, 0, 0)),
                pl.BlockSpec((C, C), lambda b: (0, 0)),
                pl.BlockSpec((1, C), lambda b: (0, 0)),
            ],
            out_specs=pl.BlockSpec((Bt, Ho, Wo, C), lambda b: (b, 0, 0, 0)),
        ),
        compiler_params=pltpu.CompilerParams(
            dimension_semantics=("parallel",),
            vmem_limit_bytes=48 * 1024 * 1024),
    )(x_ee, x_eo, x_oe, x_oo, scale, w_t, bias)

    return jnp.transpose(out_nhwc, (0, 3, 1, 2))        # NHWC -> NCHW


def _reference(x, w_conv, b_conv):
    """Pure numpy replica of AvgPool2d(3,2,ceil_mode=True) + Conv2d(C,C,1)."""
    xn = np.asarray(x)
    B, C, H, W = xn.shape
    Ho = -(-(H - 3) // 2) + 1
    Wo = -(-(W - 3) // 2) + 1
    pooled = np.zeros((B, C, Ho, Wo), np.float32)
    for oh in range(Ho):
        for ow in range(Wo):
            h0, h1 = 2 * oh, min(2 * oh + 3, H)
            w0, w1 = 2 * ow, min(2 * ow + 3, W)
            pooled[:, :, oh, ow] = xn[:, :, h0:h1, w0:w1].mean(axis=(2, 3))
    out = np.einsum('oc,bchw->bohw', np.asarray(w_conv), pooled)
    out = out + np.asarray(b_conv)[None, :, None, None]
    return out


if __name__ == "__main__":
    key = jax.random.PRNGKey(0)
    kx, kw, kb = jax.random.split(key, 3)

    B, C, H, W = 2, 4, 16, 16
    x = jax.random.normal(kx, (B, C, H, W), dtype=jnp.float32)
    # Conv2d(cin, cin, 1): weight (C, C, 1, 1) -> use squeezed (C, C); bias (C,)
    w_conv = jax.random.normal(kw, (C, C), dtype=jnp.float32) * 0.1
    b_conv = jax.random.normal(kb, (C,), dtype=jnp.float32) * 0.1

    out = downsample(x, w_conv, b_conv)
    out = jax.block_until_ready(out)

    ref = _reference(x, w_conv, b_conv)
    np.testing.assert_allclose(np.asarray(out), ref, rtol=1e-4, atol=1e-4)

    print("KERNEL_OK")
</pallas_src>

<mosaic_0001>
module attributes {stable_mosaic.version = 11 : i64} {
  func.func @_downsample_kernel(%arg0: i32, %arg1: memref<2x9x9x4xf32, #tpu.memory_space<vmem>>, %arg2: memref<2x9x8x4xf32, #tpu.memory_space<vmem>>, %arg3: memref<2x8x9x4xf32, #tpu.memory_space<vmem>>, %arg4: memref<2x8x8x4xf32, #tpu.memory_space<vmem>>, %arg5: memref<1x8x8x1xf32, #tpu.memory_space<vmem>>, %arg6: memref<4x4xf32, #tpu.memory_space<vmem>>, %arg7: memref<1x4xf32, #tpu.memory_space<vmem>>, %arg8: memref<2x8x8x4xf32, #tpu.memory_space<vmem>>) attributes {dimension_semantics = [#tpu.dimension_semantics<parallel>], iteration_bounds = array<i64: 1>, scalar_prefetch = 0 : i64, scratch_operands = 0 : i64, tpu.core_type = #tpu.core_type<tc>, window_params = [{transform_indices = @transform_0, window_bounds = array<i64: 2, 9, 9, 4>}, {transform_indices = @transform_1, window_bounds = array<i64: 2, 9, 8, 4>}, {transform_indices = @transform_2, window_bounds = array<i64: 2, 8, 9, 4>}, {transform_indices = @transform_3, window_bounds = array<i64: 2, 8, 8, 4>}, {pipeline_mode = #tpu.pipeline_mode<synchronous>, transform_indices = @transform_4, window_bounds = array<i64: 1, 8, 8, 1>}, {pipeline_mode = #tpu.pipeline_mode<synchronous>, transform_indices = @transform_5, window_bounds = array<i64: 4, 4>}, {pipeline_mode = #tpu.pipeline_mode<synchronous>, transform_indices = @transform_6, window_bounds = array<i64: 1, 4>}, {transform_indices = @transform_7, window_bounds = array<i64: 2, 8, 8, 4>}]} {
    %c0 = arith.constant 0 : index
    %c0_0 = arith.constant 0 : index
    %c0_1 = arith.constant 0 : index
    %c0_2 = arith.constant 0 : index
    %0 = vector.load %arg1[%c0, %c0_0, %c0_1, %c0_2] : memref<2x9x9x4xf32, #tpu.memory_space<vmem>>, vector<2x9x9x4xf32>
    %c0_3 = arith.constant 0 : index
    %c0_4 = arith.constant 0 : index
    %c0_5 = arith.constant 0 : index
    %c0_6 = arith.constant 0 : index
    %1 = vector.load %arg2[%c0_3, %c0_4, %c0_5, %c0_6] : memref<2x9x8x4xf32, #tpu.memory_space<vmem>>, vector<2x9x8x4xf32>
    %c0_7 = arith.constant 0 : index
    %c0_8 = arith.constant 0 : index
    %c0_9 = arith.constant 0 : index
    %c0_10 = arith.constant 0 : index
    %2 = vector.load %arg3[%c0_7, %c0_8, %c0_9, %c0_10] : memref<2x8x9x4xf32, #tpu.memory_space<vmem>>, vector<2x8x9x4xf32>
    %c0_11 = arith.constant 0 : index
    %c0_12 = arith.constant 0 : index
    %c0_13 = arith.constant 0 : index
    %c0_14 = arith.constant 0 : index
    %3 = vector.load %arg4[%c0_11, %c0_12, %c0_13, %c0_14] : memref<2x8x8x4xf32, #tpu.memory_space<vmem>>, vector<2x8x8x4xf32>
    %4 = vector.extract_strided_slice %0 {offsets = [0, 0, 0, 0], sizes = [2, 8, 8, 4], strides = [1, 1, 1, 1]} : vector<2x9x9x4xf32> to vector<2x8x8x4xf32>
    %5 = vector.extract_strided_slice %0 {offsets = [0, 0, 1, 0], sizes = [2, 8, 8, 4], strides = [1, 1, 1, 1]} : vector<2x9x9x4xf32> to vector<2x8x8x4xf32>
    %6 = arith.addf %4, %5 : vector<2x8x8x4xf32>
    %7 = vector.extract_strided_slice %0 {offsets = [0, 1, 0, 0], sizes = [2, 8, 8, 4], strides = [1, 1, 1, 1]} : vector<2x9x9x4xf32> to vector<2x8x8x4xf32>
    %8 = arith.addf %6, %7 : vector<2x8x8x4xf32>
    %9 = vector.extract_strided_slice %0 {offsets = [0, 1, 1, 0], sizes = [2, 8, 8, 4], strides = [1, 1, 1, 1]} : vector<2x9x9x4xf32> to vector<2x8x8x4xf32>
    %10 = arith.addf %8, %9 : vector<2x8x8x4xf32>
    %11 = vector.extract_strided_slice %1 {offsets = [0, 0, 0, 0], sizes = [2, 8, 8, 4], strides = [1, 1, 1, 1]} : vector<2x9x8x4xf32> to vector<2x8x8x4xf32>
    %12 = arith.addf %10, %11 : vector<2x8x8x4xf32>
    %13 = vector.extract_strided_slice %1 {offsets = [0, 1, 0, 0], sizes = [2, 8, 8, 4], strides = [1, 1, 1, 1]} : vector<2x9x8x4xf32> to vector<2x8x8x4xf32>
    %14 = arith.addf %12, %13 : vector<2x8x8x4xf32>
    %15 = vector.extract_strided_slice %2 {offsets = [0, 0, 0, 0], sizes = [2, 8, 8, 4], strides = [1, 1, 1, 1]} : vector<2x8x9x4xf32> to vector<2x8x8x4xf32>
    %16 = arith.addf %14, %15 : vector<2x8x8x4xf32>
    %17 = vector.extract_strided_slice %2 {offsets = [0, 0, 1, 0], sizes = [2, 8, 8, 4], strides = [1, 1, 1, 1]} : vector<2x8x9x4xf32> to vector<2x8x8x4xf32>
    %18 = arith.addf %16, %17 : vector<2x8x8x4xf32>
    %19 = arith.addf %18, %3 : vector<2x8x8x4xf32>
    %c0_15 = arith.constant 0 : index
    %c0_16 = arith.constant 0 : index
    %c0_17 = arith.constant 0 : index
    %c0_18 = arith.constant 0 : index
    %20 = vector.load %arg5[%c0_15, %c0_16, %c0_17, %c0_18] : memref<1x8x8x1xf32, #tpu.memory_space<vmem>>, vector<1x8x8x1xf32>
    %21 = vector.broadcast %20 : vector<1x8x8x1xf32> to vector<2x8x8x4xf32>
    %22 = arith.mulf %19, %21 : vector<2x8x8x4xf32>
    %23 = vector.shape_cast %22 : vector<2x8x8x4xf32> to vector<128x4xf32>
    %c0_19 = arith.constant 0 : index
    %c0_20 = arith.constant 0 : index
    %24 = vector.load %arg6[%c0_19, %c0_20] : memref<4x4xf32, #tpu.memory_space<vmem>>, vector<4x4xf32>
    %cst = arith.constant dense<0.000000e+00> : vector<128x4xf32>
    %25 = tpu.matmul %23, %24, %cst {dimension_numbers = #tpu.dot_dimension_numbers<[1], [0], [0], [1], [0, 0, 1, 1], [], []>} : vector<128x4xf32>, vector<4x4xf32>, vector<128x4xf32> -> vector<128x4xf32>
    %c0_21 = arith.constant 0 : index
    %c0_22 = arith.constant 0 : index
    %26 = vector.load %arg7[%c0_21, %c0_22] : memref<1x4xf32, #tpu.memory_space<vmem>>, vector<1x4xf32>
    %27 = vector.broadcast %26 : vector<1x4xf32> to vector<128x4xf32>
    %28 = arith.addf %25, %27 : vector<128x4xf32>
    %29 = vector.shape_cast %28 : vector<128x4xf32> to vector<2x8x8x4xf32>
    %c0_23 = arith.constant 0 : index
    %c0_24 = arith.constant 0 : index
    %c0_25 = arith.constant 0 : index
    %c0_26 = arith.constant 0 : index
    %30 = vector.load %arg8[%c0_23, %c0_24, %c0_25, %c0_26] : memref<2x8x8x4xf32, #tpu.memory_space<vmem>>, vector<2x8x8x4xf32>
    tpu.vector_store %arg8[%c0_23, %c0_24, %c0_25, %c0_26], %29 {strides = array<i32>} : memref<2x8x8x4xf32, #tpu.memory_space<vmem>>, vector<2x8x8x4xf32>,
    return
  }
  func.func @transform_0(%arg0: i32) -> (i32, i32, i32, i32) {
    %c0_i32 = arith.constant 0 : i32
    %c0_i32_0 = arith.constant 0 : i32
    %c0_i32_1 = arith.constant 0 : i32
    %c0_i32_2 = arith.constant 0 : i32
    return %arg0, %c0_i32, %c0_i32_0, %c0_i32_1 : i32, i32, i32, i32
  }
  func.func @transform_1(%arg0: i32) -> (i32, i32, i32, i32) {
    %c0_i32 = arith.constant 0 : i32
    %c0_i32_0 = arith.constant 0 : i32
    %c0_i32_1 = arith.constant 0 : i32
    %c0_i32_2 = arith.constant 0 : i32
    return %arg0, %c0_i32, %c0_i32_0, %c0_i32_1 : i32, i32, i32, i32
  }
  func.func @transform_2(%arg0: i32) -> (i32, i32, i32, i32) {
    %c0_i32 = arith.constant 0 : i32
    %c0_i32_0 = arith.constant 0 : i32
    %c0_i32_1 = arith.constant 0 : i32
    %c0_i32_2 = arith.constant 0 : i32
    return %arg0, %c0_i32, %c0_i32_0, %c0_i32_1 : i32, i32, i32, i32
  }
  func.func @transform_3(%arg0: i32) -> (i32, i32, i32, i32) {
    %c0_i32 = arith.constant 0 : i32
    %c0_i32_0 = arith.constant 0 : i32
    %c0_i32_1 = arith.constant 0 : i32
    %c0_i32_2 = arith.constant 0 : i32
    return %arg0, %c0_i32, %c0_i32_0, %c0_i32_1 : i32, i32, i32, i32
  }
  func.func @transform_4(%arg0: i32) -> (i32, i32, i32, i32) {
    %c0_i32 = arith.constant 0 : i32
    %c0_i32_0 = arith.constant 0 : i32
    %c0_i32_1 = arith.constant 0 : i32
    %c0_i32_2 = arith.constant 0 : i32
    %c0_i32_3 = arith.constant 0 : i32
    return %c0_i32, %c0_i32_0, %c0_i32_1, %c0_i32_2 : i32, i32, i32, i32
  }
  func.func @transform_5(%arg0: i32) -> (i32, i32) {
    %c0_i32 = arith.constant 0 : i32
    %c0_i32_0 = arith.constant 0 : i32
    %c0_i32_1 = arith.constant 0 : i32
    return %c0_i32, %c0_i32_0 : i32, i32
  }
  func.func @transform_6(%arg0: i32) -> (i32, i32) {
    %c0_i32 = arith.constant 0 : i32
    %c0_i32_0 = arith.constant 0 : i32
    %c0_i32_1 = arith.constant 0 : i32
    return %c0_i32, %c0_i32_0 : i32, i32
  }
  func.func @transform_7(%arg0: i32) -> (i32, i32, i32, i32) {
    %c0_i32 = arith.constant 0 : i32
    %c0_i32_0 = arith.constant 0 : i32
    %c0_i32_1 = arith.constant 0 : i32
    %c0_i32_2 = arith.constant 0 : i32
    return %arg0, %c0_i32, %c0_i32_0, %c0_i32_1 : i32, i32, i32, i32
  }
}

</mosaic_0001>

<bundles_post_ra>
// kernel: downsample.1
= control target key start
LH: loop header
LB: loop body
LE: loop exit
PB: predicated region body
PF: predicated region fallthrough
CT: control target
= control target key end

     0   :  { %v817_v0 = vmov 0   ;;  %vm582_vm0 = vcmask 1043456   ;;  %vm160_vm1 = vcmask 1046528   ;;  %vm533_vm2 = vcmask 31744   ;;  %s1410_s4 = inlined_call_operand.vmem [shape: f32[1,8,8,1], index: 4, kind: input, shape index: {}]   ;;  %s1411_s5 = inlined_call_operand.vmem [shape: f32[4,4], index: 5, kind: input, shape index: {}]   ;;  %s1412_s0 = inlined_call_operand.vmem [shape: f32[2,9,9,4], index: 0, kind: input, shape index: {}]   ;;  %s1413_s1 = inlined_call_operand.vmem [shape: f32[2,9,8,4], index: 1, kind: input, shape index: {}]   ;;  %s1414_s2 = inlined_call_operand.vmem [shape: f32[2,8,9,4], index: 2, kind: input, shape index: {}]   ;;  %s1415_s3 = inlined_call_operand.vmem [shape: f32[2,8,8,4], index: 3, kind: input, shape index: {}]   ;;  %s1416_s6 = inlined_call_operand.vmem [shape: f32[1,4], index: 6, kind: input, shape index: {}]   ;;  %s1417_s7 = inlined_call_operand.vmem [shape: f32[2,8,8,4], index: 7, kind: output, shape index: {}]  }
   0x1   :  { %816 = vset.pattern.permute.xlu1 %v817_v0  ;;  %815 = vset.pattern.permute.xlu0 %v817_v0  ;;  %v463_v1 = vld [vmem:[%s1410_s4 + $0x10] sm:$0xff]  ;;  %v461_v2 = vld [vmem:[%s1410_s4] sm:$0xff]  ;;  %v464_v3 = vld [vmem:[%s1410_s4 + $0x18] sm:$0xff] }
   0x2   :  { %481 = vperm.xlu1 %816, %v463_v1   ;;  %471 = vperm.xlu0 %815, %v461_v2   ;;  %v462_v4 = vld [vmem:[%s1410_s4 + $0x8] sm:$0xff]  ;;  %v465_v6 = vld [vmem:[%s1410_s4 + $0x20] sm:$0xff]  ;;  %v468_v7 = vld [vmem:[%s1410_s4 + $0x38] sm:$0xff] }
   0x3   :  { %v466_v5 = vld [vmem:[%s1410_s4 + $0x28] sm:$0xff]  ;;  %v467_v8 = vld [vmem:[%s1410_s4 + $0x30] sm:$0xff]  ;;  %v525_v9 = vld [vmem:[%s1411_s5] sm:$0xf] }
   0x4   :  { %786 = vmatprep.subr.msk.mxu0 %vm582_vm0, %v525_v9  ;;  %812 = vmatprep.subr.msk.mxu1 %vm582_vm0, %v525_v9  ;;  %v888_v10 = vld [vmem:[%s1412_s0 + $0x20] sm:$0xff]  ;;  %v31_v11 = vld [vmem:[%s1412_s0 + $0x28] sm:$0x1]  ;;  %v896_v12 = vld [vmem:[%s1412_s0 + $0xb0] sm:$0xff] }
   0x5   :  { %787 = vmatpush3.msk.msra.mxu0 %vm582_vm0, %v525_v9  ;;  %813 = vmatpush3.msk.msra.mxu1 %vm582_vm0, %v525_v9  ;;  %v49_v13 = vld [vmem:[%s1412_s0 + $0xb8] sm:$0x1]  ;;  %v167_v14 = vrot.slane %v888_v10, 1  ;;  %v168_v15 = vrot.slane %v31_v11, 1  ;;  %v191_v16 = vrot.slane %v896_v12, 1  ;;  %v26_v18 = vld [vmem:[%s1412_s0] sm:$0xff] }
   0x6   :  { %486 = vperm.xlu1 %816, %v464_v3   ;;  %476 = vperm.xlu0 %815, %v462_v4   ;;  %v192_v17 = vrot.slane %v49_v13, 1  ;;  %v27_v19 = vld [vmem:[%s1412_s0 + $0x8] sm:$0x1]  ;;  %v161_v22 = vrot.slane %v26_v18, 1  ;;  %v32_v24 = vld [vmem:[%s1412_s0 + $0x30] sm:$0xff]  ;;  %v924_v26 = vld [vmem:[%s1412_s0 + $0xc0] sm:$0xff] }
   0x7   :  { %v910_v20 = vsel %vm160_vm1, %v167_v14, %v168_v15  ;;  %v162_v23 = vrot.slane %v27_v19, 1  ;;  %v33_v25 = vld [vmem:[%s1412_s0 + $0x38] sm:$0x1]  ;;  %v51_v29 = vld [vmem:[%s1412_s0 + $0xc8] sm:$0x1]  ;;  %v28_v30 = vld [vmem:[%s1412_s0 + $0x10] sm:$0xff] }
   0x8   :  { %v913_v21 = vsel %vm160_vm1, %v191_v16, %v192_v17  ;;  %v227_v27 = vadd.f32 %v910_v20, %v888_v10  ;;  %v29_v32 = vld [vmem:[%s1412_s0 + $0x18] sm:$0x1]  ;;  %v44_v33 = vld [vmem:[%s1412_s0 + $0x90] sm:$0xff]  ;;  %v170_v35 = vrot.slane %v32_v24, 1  ;;  %v171_v36 = vrot.slane %v33_v25, 1  ;;  %v46_v47 = vld [vmem:[%s1412_s0 + $0xa0] sm:$0xff] }
   0x9   :  { %v235_v28 = vadd.f32 %v913_v21, %v896_v12  ;;  %v163_v31 = vsel %vm160_vm1, %v161_v22, %v162_v23  ;;  %v45_v34 = vld [vmem:[%s1412_s0 + $0x98] sm:$0x1]  ;;  %v194_v37 = vrot.slane %v924_v26, 1  ;;  %v195_v38 = vrot.slane %v51_v29, 1  ;;  %v47_v48 = vld [vmem:[%s1412_s0 + $0xa8] sm:$0x1] }
   0xa   :  { %496 = vperm.xlu1 %816, %v466_v5   ;;  %491 = vperm.xlu0 %815, %v465_v6   ;;  %v243_v39 = vadd.f32 %v227_v27, %v32_v24  ;;  %v225_v41 = vadd.f32 %v163_v31, %v26_v18  ;;  %v164_v42 = vrot.slane %v28_v30, 1  ;;  %v165_v43 = vrot.slane %v29_v32, 1  ;;  %v959_v52 = vld [vmem:[%s1413_s1 + $0x10] sm:$0xff]  ;;  %v966_v56 = vld [vmem:[%s1413_s1 + $0x58] sm:$0xff]  ;;  %v84_v59 = vld [vmem:[%s1414_s2 + $0x20] sm:$0xff] }
   0xb   :  { %v251_v40 = vadd.f32 %v235_v28, %v924_v26  ;;  %v185_v44 = vrot.slane %v44_v33, 1  ;;  %v186_v45 = vrot.slane %v45_v34, 1  ;;  %v172_v46 = vsel %vm160_vm1, %v170_v35, %v171_v36  ;;  %v85_v63 = vld [vmem:[%s1414_s2 + $0x28] sm:$0x1]  ;;  %v62_v1 = vld [vmem:[%s1413_s1] sm:$0xff]  ;;  %v983_v3 = vld [vmem:[%s1413_s1 + $0x18] sm:$0xff] }
   0xc   :  { %v196_v49 = vsel %vm160_vm1, %v194_v37, %v195_v38  ;;  %v271_v50 = vadd.f32 %v243_v39, %v172_v46  ;;  %v241_v51 = vadd.f32 %v225_v41, %v28_v30  ;;  %v166_v54 = vsel %vm160_vm1, %v164_v42, %v165_v43  ;;  %v100_v4 = vld [vmem:[%s1414_s2 + $0xa0] sm:$0xff]  ;;  %v101_v5 = vld [vmem:[%s1414_s2 + $0xa8] sm:$0x1]  ;;  %v52_v31 = vld [vmem:[%s1412_s0 + $0xd0] sm:$0xff] }
   0xd   :  { %v279_v53 = vadd.f32 %v251_v40, %v196_v49  ;;  %v187_v55 = vsel %vm160_vm1, %v185_v44, %v186_v45  ;;  %v188_v57 = vrot.slane %v46_v47, 1  ;;  %v189_v58 = vrot.slane %v47_v48, 1  ;;  %v1000_v15 = vld [vmem:[%s1412_s0 + $0x40] sm:$0xff]  ;;  %v35_v16 = vld [vmem:[%s1412_s0 + $0x48] sm:$0x1] }
   0xe   :  { %506 = vperm.xlu1 %816, %v468_v7   ;;  %501 = vperm.xlu0 %815, %v467_v8   ;;  %v287_v60 = vadd.f32 %v271_v50, %v959_v52  ;;  %v269_v61 = vadd.f32 %v241_v51, %v166_v54  ;;  %v233_v62 = vadd.f32 %v187_v55, %v44_v33  ;;  %v371_v6 = vrot.slane %v84_v59, 1  ;;  %v994_v8 = vld [vmem:[%s1413_s1 + $0x60] sm:$0xff]  ;;  %v63_v18 = vld [vmem:[%s1413_s1 + $0x8] sm:$0xff] }
   0xf   :  { %v295_v0 = vadd.f32 %v279_v53, %v966_v56  ;;  %v190_v2 = vsel %vm160_vm1, %v188_v57, %v189_v58  ;;  %v226_v7 = vadd.f32 %v166_v54, %v28_v30  ;;  %v372_v11 = vrot.slane %v85_v63, 1  ;;  %v80_v27 = vld [vmem:[%s1414_s2] sm:$0xff]  ;;  %v81_v28 = vld [vmem:[%s1414_s2 + $0x8] sm:$0x1]  ;;  %v72_v58 = vld [vmem:[%s1413_s1 + $0x50] sm:$0xff] }
  0x10   :  { %v303_v9 = vadd.f32 %v287_v60, %v983_v3  ;;  %v285_v13 = vadd.f32 %v269_v61, %v62_v1  ;;  %v249_v14 = vadd.f32 %v233_v62, %v46_v47  ;;  %v234_v19 = vadd.f32 %v190_v2, %v46_v47  ;;  %v71_v40 = vld [vmem:[%s1413_s1 + $0x48] sm:$0xff]  ;;  %v112_v63 = vld [vmem:[%s1415_s3] sm:$0xff]  ;;  %v1060_v1 = vld [vmem:[%s1414_s2 + $0x30] sm:$0xff] }
  0x11   :  { %v311_v17 = vadd.f32 %v295_v0, %v994_v8  ;;  %v228_v22 = vadd.f32 %v172_v46, %v32_v24  ;;  %v395_v23 = vrot.slane %v100_v4, 1  ;;  %v396_v25 = vrot.slane %v101_v5, 1  ;;  %v53_v24 = vld [vmem:[%s1412_s0 + $0xd8] sm:$0x1]  ;;  %v97_v41 = vld [vmem:[%s1414_s2 + $0x88] sm:$0x1] }
  0x12   :  { %v236_v29 = vadd.f32 %v196_v49, %v924_v26  ;;  %v242_v30 = vadd.f32 %v226_v7, %v888_v10  ;;  %v173_v32 = vrot.slane %v1000_v15, 1  ;;  %v174_v33 = vrot.slane %v35_v16, 1  ;;  %v1028_v26 = vld [vmem:[%s1414_s2 + $0x80] sm:$0xff] }
  0x13   :  { %v319_v34 = vadd.f32 %v303_v9, %v84_v59  ;;  %v373_v35 = vsel %vm160_vm1, %v371_v6, %v372_v11  ;;  %v301_v36 = vadd.f32 %v285_v13, %v63_v18  ;;  %v277_v10 = vadd.f32 %v249_v14, %v190_v2  ;;  %v122_v59 = vld [vmem:[%s1415_s3 + $0x50] sm:$0xff]  ;;  %v37_v9 = vld [vmem:[%s1412_s0 + $0x58] sm:$0x1]  ;;  %v54_v11 = vld [vmem:[%s1412_s0 + $0xe0] sm:$0xff] }
  0x14   :  { %v327_v37 = vadd.f32 %v311_v17, %v100_v4  ;;  %v365_v38 = vrot.slane %v80_v27, 1  ;;  %v366_v39 = vrot.slane %v81_v28, 1  ;;  %v250_v42 = vadd.f32 %v234_v19, %v896_v12  ;;  %v114_v12 = vld [vmem:[%s1415_s3 + $0x10] sm:$0xff]  ;;  %v55_v13 = vld [vmem:[%s1412_s0 + $0xe8] sm:$0x1]  ;;  %v1087_v17 = vld [vmem:[%s1413_s1 + $0x20] sm:$0xff] }
  0x15   :  { %v397_v43 = vsel %vm160_vm1, %v395_v23, %v396_v25  ;;  %v197_v44 = vrot.slane %v52_v31, 1  ;;  %v198_v45 = vrot.slane %v53_v24, 1  ;;  %v244_v46 = vadd.f32 %v228_v22, %v1000_v15  ;;  %v36_v2 = vld [vmem:[%s1412_s0 + $0x50] sm:$0xff]  ;;  %v1097_v19 = vld [vmem:[%s1414_s2 + $0xb8] sm:$0x1] }
  0x16   :  { %v270_v47 = vadd.f32 %v242_v30, %v910_v20  ;;  %v389_v48 = vrot.slane %v1028_v26, 1  ;;  %v175_v49 = vsel %vm160_vm1, %v173_v32, %v174_v33  ;;  %v431_v50 = vadd.f32 %v373_v35, %v319_v34  ;;  %v39_v25 = vld [vmem:[%s1412_s0 + $0x68] sm:$0x1]  ;;  %v82_v24 = vld [vmem:[%s1414_s2 + $0x10] sm:$0xff]  ;;  %v83_v32 = vld [vmem:[%s1414_s2 + $0x18] sm:$0x1] }
  0x17   :  { %v317_v51 = vadd.f32 %v301_v36, %v80_v27  ;;  %v293_v53 = vadd.f32 %v277_v10, %v71_v40  ;;  %v390_v54 = vrot.slane %v97_v41, 1  ;;  %v439_v55 = vadd.f32 %v397_v43, %v327_v37  ;;  %v40_v40 = vld [vmem:[%s1412_s0 + $0x70] sm:$0xff]  ;;  %v41_v41 = vld [vmem:[%s1412_s0 + $0x78] sm:$0x1] }
  0x18   :  { %v367_v57 = vsel %vm160_vm1, %v365_v38, %v366_v39  ;;  %v278_v20 = vadd.f32 %v250_v42, %v913_v21  ;;  %v199_v60 = vsel %vm160_vm1, %v197_v44, %v198_v45  ;;  %v252_v61 = vadd.f32 %v236_v29, %v52_v31  ;;  %v1065_v21 = vld [vmem:[%s1414_s2 + $0x38] sm:$0x1]  ;;  %v58_v42 = vld [vmem:[%s1412_s0 + $0x100] sm:$0xff] }
  0x19   :  { %v272_v62 = vadd.f32 %v244_v46, %v175_v49  ;;  %v286_v0 = vadd.f32 %v270_v47, %v63_v18  ;;  %v1070_v4 = vadd.f32 %v431_v50, %v114_v12  ;;  %v429_v5 = vadd.f32 %v367_v57, %v317_v51  ;;  %v1092_v18 = vld [vmem:[%s1414_s2 + $0xb0] sm:$0xff]  ;;  %v59_v46 = vld [vmem:[%s1412_s0 + $0x108] sm:$0x1]  ;;  %v99_v50 = vld [vmem:[%s1414_s2 + $0x98] sm:$0x1] }
  0x1a   :  { %v309_v6 = vadd.f32 %v293_v53, %v72_v58  ;;  %v391_v7 = vsel %vm160_vm1, %v389_v48, %v390_v54  ;;  %v1082_v14 = vadd.f32 %v439_v55, %v122_v59  ;;  %v294_v16 = vadd.f32 %v278_v20, %v72_v58 }
  0x1b   :  { %v229_v22 = vadd.f32 %v175_v49, %v1000_v15  ;;  %v237_v23 = vadd.f32 %v199_v60, %v52_v31  ;;  %v280_v27 = vadd.f32 %v252_v61, %v199_v60  ;;  %v288_v28 = vadd.f32 %v272_v62, %v983_v3  ;;  %v38_v15 = vld [vmem:[%s1412_s0 + $0x60] sm:$0xff]  ;;  %v56_v31 = vld [vmem:[%s1412_s0 + $0xf0] sm:$0xff]  ;;  %v57_v3 = vld [vmem:[%s1412_s0 + $0xf8] sm:$0x1] }
  0x1c   :  { %v374_v29 = vrot.slane %v1060_v1, 1  ;;  %v375_v30 = vrot.slane %v1065_v21, 1  ;;  %v176_v33 = vrot.slane %v36_v2, 1  ;;  %v177_v34 = vrot.slane %v37_v9, 1  ;;  %v98_v49 = vld [vmem:[%s1414_s2 + $0x90] sm:$0xff] }
  0x1d   :  { %v200_v35 = vrot.slane %v54_v11, 1  ;;  %v201_v36 = vrot.slane %v55_v13, 1  ;;  %v1121_v10 = vadd.f32 %v429_v5, %v112_v63  ;;  %v325_v37 = vadd.f32 %v309_v6, %v1028_v26 }
  0x1e   :  { %v398_v38 = vrot.slane %v1092_v18, 1  ;;  %v399_v39 = vrot.slane %v1097_v19, 1  ;;  %v179_v43 = vrot.slane %v38_v15, 1  ;;  %v180_v44 = vrot.slane %v39_v25, 1  ;;  %v88_v19 = vld [vmem:[%s1414_s2 + $0x40] sm:$0xff] }
  0x1f   :  { %v203_v45 = vrot.slane %v56_v31, 1  ;;  %v204_v26 = vrot.slane %v57_v3, 1  ;;  %v296_v47 = vadd.f32 %v280_v27, %v994_v8  ;;  %v304_v48 = vadd.f32 %v288_v28, %v1087_v17  ;;  %v42_v28 = vld [vmem:[%s1412_s0 + $0x80] sm:$0xff]  ;;  %v43_v3 = vld [vmem:[%s1412_s0 + $0x88] sm:$0x1] }
  0x20   :  { %v302_v51 = vadd.f32 %v286_v0, %v959_v52  ;;  %v310_v53 = vadd.f32 %v294_v16, %v966_v56  ;;  %v368_v54 = vrot.slane %v82_v24, 1  ;;  %v369_v12 = vrot.slane %v83_v32, 1  ;;  %v75_v52 = vld [vmem:[%s1413_s1 + $0x68] sm:$0xff] }
  0x21   :  { %v178_v55 = vsel %vm160_vm1, %v176_v33, %v177_v34  ;;  %v202_v8 = vsel %vm160_vm1, %v200_v35, %v201_v36  ;;  %v182_v57 = vrot.slane %v40_v40, 1  ;;  %v183_v58 = vrot.slane %v41_v41, 1 }
  0x22   :  { %v206_v20 = vrot.slane %v58_v42, 1  ;;  %v207_v59 = vrot.slane %v59_v46, 1  ;;  %v392_v60 = vrot.slane %v98_v49, 1  ;;  %v393_v61 = vrot.slane %v99_v50, 1 }
  0x23   :  { %v181_v62 = vsel %vm160_vm1, %v179_v43, %v180_v44  ;;  %v205_v63 = vsel %vm160_vm1, %v203_v45, %v204_v26  ;;  %v230_v56 = vadd.f32 %v178_v55, %v36_v2  ;;  %v238_v0 = vadd.f32 %v202_v8, %v54_v11 }
  0x24   :  { %v245_v21 = vadd.f32 %v229_v22, %v36_v2  ;;  %v253_v5 = vadd.f32 %v237_v23, %v54_v11  ;;  %v437_v6 = vadd.f32 %v391_v7, %v325_v37  ;;  %v376_v9 = vsel %vm160_vm1, %v374_v29, %v375_v30  ;;  %v60_v29 = vld [vmem:[%s1412_s0 + $0x110] sm:$0xff]  ;;  %v61_v30 = vld [vmem:[%s1412_s0 + $0x118] sm:$0x1] }
  0x25   :  { %v318_v13 = vadd.f32 %v302_v51, %v82_v24  ;;  %v326_v16 = vadd.f32 %v310_v53, %v98_v49  ;;  %v231_v25 = vadd.f32 %v181_v62, %v38_v15  ;;  %v239_v27 = vadd.f32 %v205_v63, %v56_v31  ;;  %v120_v24 = vld [vmem:[%s1415_s3 + $0x40] sm:$0xff]  ;;  %v1187_v49 = vld [vmem:[%s1414_s2 + $0x50] sm:$0xff] }
  0x26   :  { %v184_v32 = vsel %vm160_vm1, %v182_v57, %v183_v58  ;;  %v208_v2 = vsel %vm160_vm1, %v206_v20, %v207_v59  ;;  %v312_v11 = vadd.f32 %v296_v47, %v75_v52  ;;  %v320_v7 = vadd.f32 %v304_v48, %v1060_v1  ;;  %v1210_v57 = vld [vmem:[%s1414_s2 + $0xd0] sm:$0xff]  ;;  %v105_v58 = vld [vmem:[%s1414_s2 + $0xc8] sm:$0x1] }
  0x27   :  { %v370_v22 = vsel %vm160_vm1, %v368_v54, %v369_v12  ;;  %v394_v23 = vsel %vm160_vm1, %v392_v60, %v393_v61  ;;  %v246_v33 = vadd.f32 %v230_v56, %v38_v15  ;;  %v254_v34 = vadd.f32 %v238_v0, %v56_v31  ;;  %v67_v54 = vld [vmem:[%s1413_s1 + $0x28] sm:$0xff]  ;;  %v76_v12 = vld [vmem:[%s1413_s1 + $0x70] sm:$0xff] }
  0x28   :  { %v273_v35 = vadd.f32 %v245_v21, %v178_v55  ;;  %v281_v1 = vadd.f32 %v253_v5, %v202_v8  ;;  %v232_v36 = vadd.f32 %v184_v32, %v40_v40  ;;  %v240_v37 = vadd.f32 %v208_v2, %v58_v42  ;;  %v115_v21 = vld [vmem:[%s1415_s3 + $0x18] sm:$0xff]  ;;  %v113_v5 = vld [vmem:[%s1415_s3 + $0x8] sm:$0xff] }
  0x29   :  { %v261_v41 = vrot.slane %v42_v28, 1  ;;  %v262_v43 = vrot.slane %v43_v3, 1  ;;  %v264_v44 = vrot.slane %v60_v29, 1  ;;  %v265_v45 = vrot.slane %v61_v30, 1 }
  0x2a   :  { %v247_v26 = vadd.f32 %v231_v25, %v40_v40  ;;  %v255_v46 = vadd.f32 %v239_v27, %v58_v42  ;;  %v1176_v47 = vadd.f32 %v437_v6, %v120_v24  ;;  %v328_v48 = vadd.f32 %v312_v11, %v1092_v18  ;;  %v1192_v40 = vld [vmem:[%s1414_s2 + $0x58] sm:$0x1]  ;;  %v89_v18 = vld [vmem:[%s1414_s2 + $0x48] sm:$0x1]  ;;  %v68_v27 = vld [vmem:[%s1413_s1 + $0x30] sm:$0xff] }
  0x2b   :  { %v400_v15 = vsel %vm160_vm1, %v398_v38, %v399_v39  ;;  %v432_v31 = vadd.f32 %v376_v9, %v320_v7  ;;  %v274_v42 = vadd.f32 %v246_v33, %v181_v62  ;;  %v282_v50 = vadd.f32 %v254_v34, %v205_v63  ;;  %v107_v62 = vld [vmem:[%s1414_s2 + $0xd8] sm:$0x1]  ;;  %v121_v6 = vld [vmem:[%s1415_s3 + $0x48] sm:$0xff] }
  0x2c   :  { %v289_v38 = vadd.f32 %v273_v35, %v1087_v17  ;;  %v297_v39 = vadd.f32 %v281_v1, %v75_v52  ;;  %v430_v51 = vadd.f32 %v370_v22, %v318_v13  ;;  %v438_v53 = vadd.f32 %v394_v23, %v326_v16  ;;  %v104_v17 = vld [vmem:[%s1414_s2 + $0xc0] sm:$0xff]  ;;  %v69_v23 = vld [vmem:[%s1413_s1 + $0x38] sm:$0xff] }
  0x2d   :  { %v248_v55 = vadd.f32 %v232_v36, %v42_v28  ;;  %v256_v8 = vadd.f32 %v240_v37, %v60_v29  ;;  %v263_v20 = vsel %vm160_vm1, %v261_v41, %v262_v43  ;;  %v266_v59 = vsel %vm160_vm1, %v264_v44, %v265_v45  ;;  %v77_v28 = vld [vmem:[%s1413_s1 + $0x78] sm:$0xff]  ;;  %v78_v29 = vld [vmem:[%s1413_s1 + $0x80] sm:$0xff]  ;;  %v93_v45 = vld [vmem:[%s1414_s2 + $0x68] sm:$0x1] }
  0x2e   :  { %v275_v60 = vadd.f32 %v247_v26, %v184_v32  ;;  %v283_v61 = vadd.f32 %v255_v46, %v208_v2  ;;  %v380_v63 = vrot.slane %v1187_v49, 1  ;;  %v381_v52 = vrot.slane %v1192_v40, 1  ;;  %v92_v36 = vld [vmem:[%s1414_s2 + $0x60] sm:$0xff]  ;;  %v109_v46 = vld [vmem:[%s1414_s2 + $0xe8] sm:$0x1] }
  0x2f   :  { %v377_v56 = vrot.slane %v88_v19, 1  ;;  %v378_v0 = vrot.slane %v89_v18, 1  ;;  %v290_v9 = vadd.f32 %v274_v42, %v67_v54  ;;  %v298_v13 = vadd.f32 %v282_v50, %v76_v12  ;;  %v108_v26 = vld [vmem:[%s1414_s2 + $0xe0] sm:$0xff]  ;;  %v79_v40 = vld [vmem:[%s1413_s1 + $0x88] sm:$0xff] }
  0x30   :  { %v305_v16 = vadd.f32 %v289_v38, %v67_v54  ;;  %v313_v25 = vadd.f32 %v297_v39, %v76_v12  ;;  %v401_v3 = vrot.slane %v104_v17, 1  ;;  %v402_v32 = vrot.slane %v105_v58, 1  ;;  %v94_v38 = vld [vmem:[%s1414_s2 + $0x70] sm:$0xff]  ;;  %v95_v39 = vld [vmem:[%s1414_s2 + $0x78] sm:$0x1] }
  0x31   :  { %v276_v2 = vadd.f32 %v263_v20, %v248_v55  ;;  %v284_v11 = vadd.f32 %v266_v59, %v256_v8  ;;  %v404_v7 = vrot.slane %v1210_v57, 1  ;;  %v405_v22 = vrot.slane %v107_v62, 1  ;;  %v111_v12 = vld [vmem:[%s1414_s2 + $0xf8] sm:$0x1] }
  0x32   :  { %v291_v30 = vadd.f32 %v275_v60, %v68_v27  ;;  %v299_v24 = vadd.f32 %v283_v61, %v77_v28  ;;  %v440_v33 = vadd.f32 %v400_v15, %v328_v48  ;;  %v1247_v34 = vadd.f32 %v432_v31, %v115_v21  ;;  %v70_v31 = vld [vmem:[%s1413_s1 + $0x40] sm:$0xff]  ;;  %v123_v62 = vld [vmem:[%s1415_s3 + $0x58] sm:$0xff] }
  0x33   :  { %v1249_v35 = vadd.f32 %v430_v51, %v113_v5  ;;  %v1251_v1 = vadd.f32 %v438_v53, %v121_v6  ;;  %v306_v37 = vadd.f32 %v290_v9, %v68_v27  ;;  %v314_v41 = vadd.f32 %v298_v13, %v77_v28  ;;  %v110_v51 = vld [vmem:[%s1414_s2 + $0xf0] sm:$0xff] }
  0x34   :  { %v321_v43 = vadd.f32 %v305_v16, %v88_v19  ;;  %v329_v44 = vadd.f32 %v313_v25, %v104_v17  ;;  %v379_v48 = vsel %vm160_vm1, %v377_v56, %v378_v0  ;;  %v403_v15 = vsel %vm160_vm1, %v401_v3, %v402_v32 }
  0x35   :  { %v292_v42 = vadd.f32 %v276_v2, %v69_v23  ;;  %v300_v50 = vadd.f32 %v284_v11, %v78_v29  ;;  %v382_v19 = vsel %vm160_vm1, %v380_v63, %v381_v52  ;;  %v406_v18 = vsel %vm160_vm1, %v404_v7, %v405_v22  ;;  %v116_v63 = vld [vmem:[%s1415_s3 + $0x20] sm:$0xff] }
  0x36   :  { %v307_v53 = vadd.f32 %v291_v30, %v69_v23  ;;  %v315_v54 = vadd.f32 %v299_v24, %v78_v29  ;;  %v383_v55 = vrot.slane %v92_v36, 1  ;;  %v384_v8 = vrot.slane %v93_v45, 1  ;;  %v124_v11 = vld [vmem:[%s1415_s3 + $0x60] sm:$0xff] }
  0x37   :  { %v407_v17 = vrot.slane %v108_v26, 1  ;;  %v408_v58 = vrot.slane %v109_v46, 1  ;;  %v322_v20 = vadd.f32 %v306_v37, %v1187_v49  ;;  %v330_v59 = vadd.f32 %v314_v41, %v1210_v57 }
  0x38   :  { %v433_v60 = vadd.f32 %v379_v48, %v321_v43  ;;  %v441_v61 = vadd.f32 %v403_v15, %v329_v44  ;;  %v308_v52 = vadd.f32 %v292_v42, %v70_v31  ;;  %v316_v56 = vadd.f32 %v300_v50, %v79_v40 }
  0x39   :  { %v386_v0 = vrot.slane %v94_v38, 1  ;;  %v387_v21 = vrot.slane %v95_v39, 1  ;;  %v410_v9 = vrot.slane %v110_v51, 1  ;;  %v411_v49 = vrot.slane %v111_v12, 1  ;;  %v119_v39 = vld [vmem:[%s1415_s3 + $0x38] sm:$0xff] }
  0x3a   :  { %v323_v13 = vadd.f32 %v307_v53, %v92_v36  ;;  %v331_v57 = vadd.f32 %v315_v54, %v108_v26  ;;  %v385_v27 = vsel %vm160_vm1, %v383_v55, %v384_v8  ;;  %v409_v28 = vsel %vm160_vm1, %v407_v17, %v408_v58  ;;  %v125_v36 = vld [vmem:[%s1415_s3 + $0x68] sm:$0xff]  ;;  %v126_v26 = vld [vmem:[%s1415_s3 + $0x70] sm:$0xff] }
  0x3b   :  { %v456_v3 = vadd.f32 %v440_v33, %v123_v62  ;;  %v434_v32 = vadd.f32 %v382_v19, %v322_v20  ;;  %v442_v2 = vadd.f32 %v406_v18, %v330_v59  ;;  %v449_v7 = vadd.f32 %v433_v60, %v116_v63  ;;  %v117_v33 = vld [vmem:[%s1415_s3 + $0x28] sm:$0xff]  ;;  %v751_v60 = vld [vmem:[%s1416_s6] ss:$0 sm:$0xff] }
  0x3c   :  { %v324_v22 = vadd.f32 %v308_v52, %v94_v38  ;;  %v435_v37 = vadd.f32 %v385_v27, %v323_v13  ;;  %v443_v41 = vadd.f32 %v409_v28, %v331_v57  ;;  %v457_v45 = vadd.f32 %v441_v61, %v124_v11 }
  0x3d   :  { %v450_v46 = vadd.f32 %v434_v32, %v117_v33  ;;  %v458_v48 = vadd.f32 %v442_v2, %v125_v36 }
  0x3e   :  { %v459_v42 = vadd.f32 %v443_v41, %v126_v26 }
  0x81   :  { %v482_v5 = vpop.permute.xlu1 %481  ;;  %v472_v6 = vpop.permute.xlu0 %471 }
  0x82   :  { %v509_v16 = vmul.f32 %v472_v6, %v1121_v10  ;;  %v517_v25 = vmul.f32 %v472_v6, %v1176_v47  ;;  %v332_v10 = vadd.f32 %v316_v56, %v110_v51  ;;  %v388_v47 = vsel %vm160_vm1, %v386_v0, %v387_v21  ;;  %v127_v51 = vld [vmem:[%s1415_s3 + $0x78] sm:$0xff] }
  0x83   :  { %v511_v23 = vmul.f32 %v482_v5, %v1070_v4  ;;  %v519_v29 = vmul.f32 %v482_v5, %v1082_v14  ;;  %v412_v4 = vsel %vm160_vm1, %v410_v9, %v411_v49  ;;  %v118_v14 = vld [vmem:[%s1415_s3 + $0x30] sm:$0xff] }
  0x84   :  { %788 = vmatprep.mubr.msk.f32.mxu0 %vm533_vm2, %v509_v16  ;;  %800 = vmatprep.mubr.msk.f32.mxu1 %vm533_vm2, %v517_v25  ;;  %v444_v31 = vadd.f32 %v412_v4, %v332_v10  ;;  %v451_v40 = vadd.f32 %v435_v37, %v118_v14 }
  0x85   :  { %v487_v30 = vpop.permute.xlu1 %486  ;;  %v477_v24 = vpop.permute.xlu0 %476 }
  0x86   :  { %v510_v43 = vmul.f32 %v477_v24, %v1249_v35  ;;  %v518_v44 = vmul.f32 %v477_v24, %v1251_v1  ;;  %v436_v35 = vadd.f32 %v388_v47, %v324_v22  ;;  %v512_v50 = vmul.f32 %v487_v30, %v1247_v34 }
  0x87   :  { %v520_v19 = vmul.f32 %v487_v30, %v456_v3  ;;  %v460_v54 = vadd.f32 %v444_v31, %v127_v51 }
  0x88   :  { %789 = vmatmul.mubr.msk.f32.vlgmr.msra.gmra.mrb[0].mxu0 %vm533_vm2, %v510_v43  ;;  %801 = vmatmul.mubr.msk.f32.vlgmr.msra.gmra.mrb[0].mxu1 %vm533_vm2, %v518_v44  ;;  %v452_v53 = vadd.f32 %v436_v35, %v119_v39 }
  0x89   :  { %v497_v15 = vpop.permute.xlu1 %496  ;;  %v492_v1 = vpop.permute.xlu0 %491  ;;  %791 = vmatprep.mubr.msk.f32.mxu0 %vm533_vm2, %v511_v23  ;;  %803 = vmatprep.mubr.msk.f32.mxu1 %vm533_vm2, %v519_v29 }
  0x8a   :  { %v513_v18 = vmul.f32 %v492_v1, %v449_v7  ;;  %v521_v38 = vmul.f32 %v492_v1, %v457_v45  ;;  %v514_v34 = vmul.f32 %v497_v15, %v450_v46  ;;  %v522_v55 = vmul.f32 %v497_v15, %v458_v48 }
  0x8c   :  { %792 = vmatmul.mubr.msk.f32.gmra.mrb[2].mxu0 %vm533_vm2, %v512_v50  ;;  %804 = vmatmul.mubr.msk.f32.gmra.mrb[2].mxu1 %vm533_vm2, %v520_v19 }
  0x8d   :  { %v502_v12 = vpop.permute.xlu0 %501  ;;  %794 = vmatprep.mubr.msk.f32.mxu0 %vm533_vm2, %v513_v18  ;;  %806 = vmatprep.mubr.msk.f32.mxu1 %vm533_vm2, %v521_v38  ;;  %v507_v58 = vpop.permute.xlu1 %506 }
  0x8e   :  { %v515_v8 = vmul.f32 %v502_v12, %v451_v40  ;;  %v523_v17 = vmul.f32 %v502_v12, %v459_v42  ;;  %v516_v20 = vmul.f32 %v507_v58, %v452_v53  ;;  %v524_v59 = vmul.f32 %v507_v58, %v460_v54 }
  0x90   :  { %795 = vmatmul.mubr.msk.f32.gmra.mrb[4].mxu0 %vm533_vm2, %v514_v34  ;;  %807 = vmatmul.mubr.msk.f32.gmra.mrb[4].mxu1 %vm533_vm2, %v522_v55 }
  0x91   :  { %797 = vmatprep.mubr.msk.f32.mxu0 %vm533_vm2, %v515_v8  ;;  %809 = vmatprep.mubr.msk.f32.mxu1 %vm533_vm2, %v523_v17 }
  0x94   :  { %798 = vmatmul.mubr.msk.f32.gmra.mrb[6].mxu0 %vm533_vm2, %v516_v20  ;;  %810 = vmatmul.mubr.msk.f32.gmra.mrb[6].mxu1 %vm533_vm2, %v524_v59 }
 0x15b   :  { %v790_v61 = vpop.f32.mrb[0].mxu0  ;;  %v802_v62 = vpop.f32.mrb[0].mxu1 }
 0x15c   :  { %v658_v63 = vadd.f32 %v790_v61, %v751_v60  ;;  %v698_v52 = vadd.f32 %v802_v62, %v751_v60  ;;  %v652_v56 = vpop.f32.mrb[1].mxu0  ;;  %v692_v0 = vpop.f32.mrb[1].mxu1 }
 0x15d   :  { %v653_v21 = vadd.f32 %v751_v60, %v652_v56  ;;  %v693_v5 = vadd.f32 %v751_v60, %v692_v0 }
 0x15e   :  { %732 = vst.msk [vmem:[%s1417_s7 + $0x8] sm:$0xff] %vm533_vm2, %v658_v63  ;;  %740 = vst.msk [vmem:[%s1417_s7 + $0x48] sm:$0xff] %vm533_vm2, %v698_v52 }
 0x15f   :  { %731 = vst.msk [vmem:[%s1417_s7] sm:$0xff] %vm533_vm2, %v653_v21  ;;  %739 = vst.msk [vmem:[%s1417_s7 + $0x40] sm:$0xff] %vm533_vm2, %v693_v5  ;;  %v793_v6 = vpop.f32.mrb[2].mxu0  ;;  %v805_v9 = vpop.f32.mrb[2].mxu1 }
 0x160   :  { %v668_v49 = vadd.f32 %v793_v6, %v751_v60  ;;  %v708_v13 = vadd.f32 %v805_v9, %v751_v60  ;;  %v662_v57 = vpop.f32.mrb[3].mxu0  ;;  %v702_v16 = vpop.f32.mrb[3].mxu1 }
 0x161   :  { %v663_v25 = vadd.f32 %v751_v60, %v662_v57  ;;  %v703_v27 = vadd.f32 %v751_v60, %v702_v16 }
 0x162   :  { %734 = vst.msk [vmem:[%s1417_s7 + $0x18] sm:$0xff] %vm533_vm2, %v668_v49  ;;  %742 = vst.msk [vmem:[%s1417_s7 + $0x58] sm:$0xff] %vm533_vm2, %v708_v13 }
 0x163   :  { %733 = vst.msk [vmem:[%s1417_s7 + $0x10] sm:$0xff] %vm533_vm2, %v663_v25  ;;  %741 = vst.msk [vmem:[%s1417_s7 + $0x50] sm:$0xff] %vm533_vm2, %v703_v27  ;;  %v796_v28 = vpop.f32.mrb[4].mxu0  ;;  %v808_v3 = vpop.f32.mrb[4].mxu1 }
 0x164   :  { %v678_v32 = vadd.f32 %v796_v28, %v751_v60  ;;  %v718_v2 = vadd.f32 %v808_v3, %v751_v60  ;;  %v672_v11 = vpop.f32.mrb[5].mxu0  ;;  %v712_v7 = vpop.f32.mrb[5].mxu1 }
 0x165   :  { %v673_v22 = vadd.f32 %v751_v60, %v672_v11  ;;  %v713_v10 = vadd.f32 %v751_v60, %v712_v7 }
 0x166   :  { %736 = vst.msk [vmem:[%s1417_s7 + $0x28] sm:$0xff] %vm533_vm2, %v678_v32  ;;  %744 = vst.msk [vmem:[%s1417_s7 + $0x68] sm:$0xff] %vm533_vm2, %v718_v2 }
 0x167   :  { %735 = vst.msk [vmem:[%s1417_s7 + $0x20] sm:$0xff] %vm533_vm2, %v673_v22  ;;  %743 = vst.msk [vmem:[%s1417_s7 + $0x60] sm:$0xff] %vm533_vm2, %v713_v10  ;;  %v799_v47 = vpop.f32.mrb[6].mxu0  ;;  %v811_v23 = vpop.f32.mrb[6].mxu1 }
 0x168   :  { %v688_v29 = vadd.f32 %v799_v47, %v751_v60  ;;  %v728_v30 = vadd.f32 %v811_v23, %v751_v60  ;;  %v682_v24 = vpop.f32.mrb[7].mxu0  ;;  %v722_v33 = vpop.f32.mrb[7].mxu1 }
 0x169   :  { %v683_v36 = vadd.f32 %v751_v60, %v682_v24  ;;  %v723_v37 = vadd.f32 %v751_v60, %v722_v33 }
 0x16a   :  { %738 = vst.msk [vmem:[%s1417_s7 + $0x38] sm:$0xff] %vm533_vm2, %v688_v29  ;;  %746 = vst.msk [vmem:[%s1417_s7 + $0x78] sm:$0xff] %vm533_vm2, %v728_v30 }
 0x16b   :  { %737 = vst.msk [vmem:[%s1417_s7 + $0x30] sm:$0xff] %vm533_vm2, %v683_v36  ;;  %745 = vst.msk [vmem:[%s1417_s7 + $0x70] sm:$0xff] %vm533_vm2, %v723_v37 }

</bundles_post_ra>
